<compile_context>
chip_gen: v5e
topology: v5e:2x2
jax: 0.10.0
libtpu: 0.0.40
codegen_flags: <defaults>
</compile_context>

<pallas_src>
import jax
import jax.numpy as jnp
from jax.experimental import pallas as pl
from jax.experimental.pallas import tpu as pltpu


# ----------------------------------------------------------------------------- #
# Pallas kernel: per-block partial sums of smooth-L1 (loc) and sigmoid focal (cls)
# ----------------------------------------------------------------------------- #
def _make_loss_kernel(A, TA, need_mask):
    TL = TA * 4        # loc lanes per block (coord-interleaved: a0c0 a0c1 a0c2 a0c3 a1c0 ...)
    A4 = A * 4

    def kernel(locp_ref, loct_ref, locw_ref, confx_ref, conft_ref,
               loc_out_ref, cls_out_ref):
        k = pl.program_id(0)

        # ---- localization: smooth-L1 (beta=1) on positive anchors ----------
        d = locp_ref[...].astype(jnp.float32) - loct_ref[...].astype(jnp.float32)  # [B, TL]
        w = locw_ref[...].astype(jnp.float32)                                      # 0/1 per (anchor, coord)
        if need_mask:
            lane4 = jax.lax.broadcasted_iota(jnp.int32, d.shape, 1)
            valid4 = (k * TL + lane4) < A4
            d = jnp.where(valid4, d, 0.0)
            w = jnp.where(valid4, w, 0.0)
        ad = jnp.abs(d)
        sl1 = jnp.where(ad < 1.0, 0.5 * d * d, ad - 0.5)
        loc_partial = jnp.sum(sl1 * w)

        # ---- classification: sigmoid focal loss (gamma=2, alpha=0.25) ------
        x = confx_ref[...].astype(jnp.float32)      # [BC, TA] logits
        lab = conft_ref[...]                        # [BC, TA] int32 (-1 ignore / 0 bg / >0 class)
        t = lab.astype(jnp.float32)                 # torch semantics: raw label broadcast as target
        keep = (lab > -1).astype(jnp.float32)       # not-ignored mask
        if need_mask:
            lane = jax.lax.broadcasted_iota(jnp.int32, x.shape, 1)
            valid = (k * TA + lane) < A
            x = jnp.where(valid, x, 0.0)
            t = jnp.where(valid, t, 0.0)
            keep = jnp.where(valid, keep, 0.0)
        # shared exp: sigmoid and log-term both derived from e = exp(-|x|)
        e = jnp.exp(-jnp.abs(x))
        r = pl.reciprocal(1.0 + e, approx=True)                     # EUP slot
        p = jnp.where(x >= 0.0, 1.0, e) * r                         # sigmoid(x)
        pt = (1.0 - p) * t + p * (1.0 - t)
        wf = (0.25 * t + 0.75 * (1.0 - t)) * keep * pt * pt         # alpha weight * pt**gamma
        bce = jnp.maximum(x, 0.0) - x * t + jnp.log(1.0 + e)        # stable BCE-with-logits
        cls_partial = jnp.sum(bce * wf)

        # lane-dense per-block partial-sum outputs (scalar broadcast across 128 lanes)
        loc_out_ref[...] = jnp.full(loc_out_ref.shape, loc_partial, jnp.float32)
        cls_out_ref[...] = jnp.full(cls_out_ref.shape, cls_partial, jnp.float32)

    return kernel


def _multibox_losses_pallas(loc_preds, loc_targets, conf_preds, conf_targets,
                            *, anchor_tile=2048):
    B, A, _ = loc_preds.shape
    C = conf_preds.shape[-1]
    BC = B * C

    # ---- layout plumbing: free reshapes for model outputs ------------------
    locp = loc_preds.reshape(B, A * 4)                               # free (contiguous)
    loct = loc_targets.astype(loc_preds.dtype).reshape(B, A * 4)     # built fresh by matching glue
    pos = conf_targets > 0
    # 0/1 positive weight in the same coord-interleaved layout, streamed as bf16.
    locw = jnp.broadcast_to(pos[:, :, None], (B, A, 4)).astype(jnp.bfloat16).reshape(B, A * 4)
    if C == 1:
        confx = conf_preds.reshape(B, A)                             # free squeeze
        conft = conf_targets.astype(jnp.int32)
    else:
        # Rare path; keeps the torch broadcast-the-raw-label semantics for C > 1.
        confx = jnp.transpose(conf_preds, (0, 2, 1)).reshape(BC, A)
        conft = jnp.repeat(conf_targets.astype(jnp.int32), C, axis=0)

    # ---- tiling: big anchor tiles, cdiv grid, no divisibility requirement --
    if A <= anchor_tile:
        TA = A
    else:
        TA = max(128, (anchor_tile // 128) * 128)
    G = pl.cdiv(A, TA)
    need_mask = (A % TA) != 0
    TL = TA * 4

    kernel = _make_loss_kernel(A, TA, need_mask)
    loc_part, cls_part = pl.pallas_call(
        kernel,
        out_shape=(jax.ShapeDtypeStruct((G, 128), jnp.float32),
                   jax.ShapeDtypeStruct((G, 128), jnp.float32)),
        grid_spec=pltpu.PrefetchScalarGridSpec(
            num_scalar_prefetch=0,
            grid=(G,),
            in_specs=[
                pl.BlockSpec((B, TL), lambda k: (0, k)),    # loc preds   (native dtype)
                pl.BlockSpec((B, TL), lambda k: (0, k)),    # loc targets
                pl.BlockSpec((B, TL), lambda k: (0, k)),    # positive weight (bf16)
                pl.BlockSpec((BC, TA), lambda k: (0, k)),   # conf logits
                pl.BlockSpec((BC, TA), lambda k: (0, k)),   # conf targets (int32)
            ],
            out_specs=(pl.BlockSpec((1, 128), lambda k: (k, 0)),
                       pl.BlockSpec((1, 128), lambda k: (k, 0))),
        ),
        compiler_params=pltpu.CompilerParams(
            dimension_semantics=("parallel",)),              # lets v7x split anchors across 2 TCs
    )(locp, loct, locw, confx, conft)

    # tiny final reduction + normalization in XLA
    num_pos = jnp.maximum(jnp.sum(pos).astype(jnp.float32), 1.0)   # clamp: no NaN with zero positives
    loc_loss = jnp.sum(loc_part[:, 0]) / num_pos
    cls_loss = (jnp.sum(cls_part[:, 0]) / num_pos)[None]           # shape (1,), mirrors the torch module
    return loc_loss, cls_loss


# ----------------------------------------------------------------------------- #
# Plain-JAX glue: anchor matching (external `match_focal_loss` in the original code)
# ----------------------------------------------------------------------------- #
def _point_form(priors):
    return jnp.concatenate([priors[:, :2] - priors[:, 2:] / 2.0,
                            priors[:, :2] + priors[:, 2:] / 2.0], axis=1)


def _jaccard(box_a, box_b):
    max_xy = jnp.minimum(box_a[:, None, 2:], box_b[None, :, 2:])
    min_xy = jnp.maximum(box_a[:, None, :2], box_b[None, :, :2])
    inter = jnp.prod(jnp.maximum(max_xy - min_xy, 0.0), axis=-1)
    area_a = jnp.prod(box_a[:, 2:] - box_a[:, :2], axis=-1)[:, None]
    area_b = jnp.prod(box_b[:, 2:] - box_b[:, :2], axis=-1)[None, :]
    return inter / (area_a + area_b - inter)


def _encode(matched, priors, variances):
    g_cxcy = (matched[:, :2] + matched[:, 2:]) / 2.0 - priors[:, :2]
    g_cxcy = g_cxcy / (variances[0] * priors[:, 2:])
    g_wh = (matched[:, 2:] - matched[:, :2]) / priors[:, 2:]
    g_wh = jnp.log(g_wh) / variances[1]
    return jnp.concatenate([g_cxcy, g_wh], axis=1)


def match_focal_loss(threshold, truths, priors, variances, labels):
    # TODO(synk): `match_focal_loss` is external to the provided module; reproduced here as
    # standard SSD bipartite matching + encode, with an ignore band [0.4, threshold) -> label -1.
    overlaps = _jaccard(truths, _point_form(priors))          # [n_obj, n_priors]
    best_prior_idx = jnp.argmax(overlaps, axis=1)             # [n_obj]
    best_truth_overlap = jnp.max(overlaps, axis=0)            # [n_priors]
    best_truth_idx = jnp.argmax(overlaps, axis=0)             # [n_priors]
    best_truth_overlap = best_truth_overlap.at[best_prior_idx].set(2.0)
    best_truth_idx = best_truth_idx.at[best_prior_idx].set(jnp.arange(truths.shape[0]))
    matched = truths[best_truth_idx]                          # [n_priors, 4]
    conf = labels[best_truth_idx].astype(jnp.int32) + 1
    conf = jnp.where(best_truth_overlap < threshold,
                     jnp.where(best_truth_overlap < 0.4,
                               jnp.zeros_like(conf), -jnp.ones_like(conf)),
                     conf)
    loc = _encode(matched, priors, variances)
    return loc, conf


def build_targets(priors, targets, threshold, variance):
    loc_t, conf_t = [], []
    for idx in range(len(targets)):
        truths = targets[idx][:, :-1]
        labels = targets[idx][:, -1]
        lt, ct = match_focal_loss(threshold, truths, priors, variance, labels)
        loc_t.append(lt)
        conf_t.append(ct)
    return jnp.stack(loc_t), jnp.stack(conf_t)


def multibox_focal_loss(predictions, priors, targets, *,
                        num_classes=1, overlap_thresh=0.5, variance=(0.1, 0.2),
                        anchor_tile=2048):
    """JAX/Pallas equivalent of MultiBoxFocalLoss.forward."""
    del num_classes  # implied by conf_preds.shape[-1]; kept for API parity with the torch module
    loc_preds, conf_preds, _ = predictions
    loc_targets, conf_targets = build_targets(priors, targets, overlap_thresh, variance)
    return _multibox_losses_pallas(loc_preds, loc_targets, conf_preds, conf_targets,
                                   anchor_tile=anchor_tile)


# ----------------------------------------------------------------------------- #
# Pure-JAX reference (for correctness check)
# ----------------------------------------------------------------------------- #
def _reference(loc_preds, conf_preds, loc_t, conf_t):
    pos = conf_t > 0
    num_pos = jnp.maximum(jnp.sum(pos).astype(jnp.float32), 1.0)
    diff = loc_preds - loc_t
    ad = jnp.abs(diff)
    sl1 = jnp.where(ad < 1.0, 0.5 * diff * diff, ad - 0.5)
    loc_loss = jnp.sum(sl1 * pos[..., None].astype(jnp.float32))
    x = conf_preds
    t = conf_t.astype(jnp.float32)[..., None]
    mask = (conf_t > -1).astype(jnp.float32)[..., None]
    p = jax.nn.sigmoid(x)
    pt = (1.0 - p) * t + p * (1.0 - t)
    w = (0.25 * t + 0.75 * (1.0 - t)) * mask * pt * pt
    bce = jnp.maximum(x, 0.0) - x * t + jnp.log(1.0 + jnp.exp(-jnp.abs(x)))
    cls_loss = jnp.sum(bce * w)
    return loc_loss / num_pos, cls_loss / num_pos


# ----------------------------------------------------------------------------- #
# Demo
# ----------------------------------------------------------------------------- #
def make_priors(fmap=16, sizes=(0.1, 0.2)):
    cs = (jnp.arange(fmap, dtype=jnp.float32) + 0.5) / fmap
    cy, cx = jnp.meshgrid(cs, cs, indexing="ij")
    centers = jnp.stack([cx.ravel(), cy.ravel()], axis=1)           # [fmap*fmap, 2]
    out = []
    for s in sizes:
        wh = jnp.full((centers.shape[0], 2), s, dtype=jnp.float32)
        out.append(jnp.concatenate([centers, wh], axis=1))
    return jnp.concatenate(out, axis=0)                             # center-form [A, 4]


if __name__ == "__main__":
    key = jax.random.PRNGKey(0)
    B = 2
    num_classes = 1

    priors = make_priors(fmap=16, sizes=(0.1, 0.2, 0.3, 0.4))       # [1024, 4]
    A = priors.shape[0]

    k1, k2 = jax.random.split(key)
    loc_preds = 0.1 * jax.random.normal(k1, (B, A, 4), dtype=jnp.float32)
    conf_preds = jax.random.normal(k2, (B, A, num_classes), dtype=jnp.float32)

    # Ground truth boxes per image: [x1, y1, x2, y2, label] (label 0 = face).
    targets = [
        jnp.array([[0.20, 0.20, 0.40, 0.40, 0.0],
                   [0.55, 0.30, 0.75, 0.50, 0.0]], dtype=jnp.float32),
        jnp.array([[0.10, 0.60, 0.30, 0.80, 0.0],
                   [0.60, 0.60, 0.80, 0.80, 0.0],
                   [0.35, 0.10, 0.55, 0.30, 0.0]], dtype=jnp.float32),
    ]

    # Reference values (pure JAX).
    loc_t, conf_t = build_targets(priors, targets, 0.5, (0.1, 0.2))
    ref_loc, ref_cls = _reference(loc_preds, conf_preds, loc_t, conf_t)

    # cls uses an approximate EUP reciprocal inside the kernel -> slightly looser tolerance.
    def check(anchor_tile):
        loc_loss, cls_loss = multibox_focal_loss(
            (loc_preds, conf_preds, None), priors, targets,
            num_classes=num_classes, overlap_thresh=0.5, variance=(0.1, 0.2),
            anchor_tile=anchor_tile)
        jax.block_until_ready((loc_loss, cls_loss))
        assert jnp.allclose(loc_loss, ref_loc, rtol=1e-3, atol=1e-5), (anchor_tile, loc_loss, ref_loc)
        assert jnp.allclose(cls_loss[0], ref_cls, rtol=1e-2, atol=1e-5), (anchor_tile, cls_loss, ref_cls)

    check(2048)   # single big block (TA = A)
    check(256)    # multi-block grid, tile divides A
    check(384)    # multi-block grid, tile does NOT divide A -> exercises the in-kernel lane mask

    print("KERNEL_OK")
</pallas_src>

<mosaic_0001>
module attributes {stable_mosaic.version = 11 : i64} {
  func.func @kernel(%arg0: i32, %arg1: memref<2x4096xf32, #tpu.memory_space<vmem>>, %arg2: memref<2x4096xf32, #tpu.memory_space<vmem>>, %arg3: memref<2x4096xbf16, #tpu.memory_space<vmem>>, %arg4: memref<2x1024xf32, #tpu.memory_space<vmem>>, %arg5: memref<2x1024xi32, #tpu.memory_space<vmem>>, %arg6: memref<1x128xf32, #tpu.memory_space<vmem>>, %arg7: memref<1x128xf32, #tpu.memory_space<vmem>>) attributes {dimension_semantics = [#tpu.dimension_semantics<parallel>], iteration_bounds = array<i64: 1>, scalar_prefetch = 0 : i64, scratch_operands = 0 : i64, tpu.core_type = #tpu.core_type<tc>, window_params = [{transform_indices = @transform_0, window_bounds = array<i64: 2, 4096>}, {transform_indices = @transform_1, window_bounds = array<i64: 2, 4096>}, {transform_indices = @transform_2, window_bounds = array<i64: 2, 4096>}, {transform_indices = @transform_3, window_bounds = array<i64: 2, 1024>}, {transform_indices = @transform_4, window_bounds = array<i64: 2, 1024>}, {transform_indices = @transform_5, window_bounds = array<i64: 1, 128>}, {transform_indices = @transform_6, window_bounds = array<i64: 1, 128>}]} {
    %c0 = arith.constant 0 : index
    %c0_0 = arith.constant 0 : index
    %0 = vector.load %arg1[%c0, %c0_0] : memref<2x4096xf32, #tpu.memory_space<vmem>>, vector<2x4096xf32>
    %c0_1 = arith.constant 0 : index
    %c0_2 = arith.constant 0 : index
    %1 = vector.load %arg2[%c0_1, %c0_2] : memref<2x4096xf32, #tpu.memory_space<vmem>>, vector<2x4096xf32>
    %2 = arith.subf %0, %1 : vector<2x4096xf32>
    %c0_3 = arith.constant 0 : index
    %c0_4 = arith.constant 0 : index
    %3 = vector.load %arg3[%c0_3, %c0_4] : memref<2x4096xbf16, #tpu.memory_space<vmem>>, vector<2x4096xbf16>
    %4 = arith.extf %3 : vector<2x4096xbf16> to vector<2x4096xf32>
    %5 = math.absf %2 : vector<2x4096xf32>
    %cst = arith.constant 1.000000e+00 : f32
    %6 = vector.broadcast %cst : f32 to vector<2x4096xf32>
    %7 = arith.cmpf olt, %5, %6 : vector<2x4096xf32>
    %cst_5 = arith.constant 5.000000e-01 : f32
    %8 = vector.broadcast %cst_5 : f32 to vector<2x4096xf32>
    %9 = arith.mulf %8, %2 : vector<2x4096xf32>
    %10 = arith.mulf %9, %2 : vector<2x4096xf32>
    %cst_6 = arith.constant 5.000000e-01 : f32
    %11 = vector.broadcast %cst_6 : f32 to vector<2x4096xf32>
    %12 = arith.subf %5, %11 : vector<2x4096xf32>
    %13 = arith.select %7, %10, %12 : vector<2x4096xi1>, vector<2x4096xf32>
    %14 = arith.mulf %13, %4 : vector<2x4096xf32>
    %15 = vector.shape_cast %14 : vector<2x4096xf32> to vector<1x2x4096xf32>
    %cst_7 = arith.constant dense<0.000000e+00> : vector<1xf32>
    %16 = vector.multi_reduction <add>, %15, %cst_7 [1, 2] : vector<1x2x4096xf32> to vector<1xf32>
    %17 = vector.shape_cast %16 : vector<1xf32> to vector<1x1x1xf32>
    %18 = vector.extract %17[0, 0, 0] : f32 from vector<1x1x1xf32>
    %c0_8 = arith.constant 0 : index
    %c0_9 = arith.constant 0 : index
    %19 = vector.load %arg4[%c0_8, %c0_9] : memref<2x1024xf32, #tpu.memory_space<vmem>>, vector<2x1024xf32>
    %c0_10 = arith.constant 0 : index
    %c0_11 = arith.constant 0 : index
    %20 = vector.load %arg5[%c0_10, %c0_11] : memref<2x1024xi32, #tpu.memory_space<vmem>>, vector<2x1024xi32>
    %21 = arith.sitofp %20 : vector<2x1024xi32> to vector<2x1024xf32>
    %c-1_i32 = arith.constant -1 : i32
    %22 = vector.broadcast %c-1_i32 : i32 to vector<2x1024xi32>
    %23 = arith.cmpi sgt, %20, %22 : vector<2x1024xi32>
    %24 = arith.extui %23 : vector<2x1024xi1> to vector<2x1024xi32>
    %25 = arith.sitofp %24 : vector<2x1024xi32> to vector<2x1024xf32>
    %26 = math.absf %19 : vector<2x1024xf32>
    %cst_12 = arith.constant 0.000000e+00 : f32
    %27 = vector.broadcast %cst_12 : f32 to vector<2x1024xf32>
    %28 = arith.subf %27, %26 : vector<2x1024xf32>
    %29 = math.exp %28 : vector<2x1024xf32>
    %cst_13 = arith.constant 1.000000e+00 : f32
    %30 = vector.broadcast %cst_13 : f32 to vector<2x1024xf32>
    %31 = arith.addf %30, %29 : vector<2x1024xf32>
    %32 = tpu.reciprocal %31 {approx = true} : vector<2x1024xf32> -> vector<2x1024xf32>
    %cst_14 = arith.constant 0.000000e+00 : f32
    %33 = vector.broadcast %cst_14 : f32 to vector<2x1024xf32>
    %34 = arith.cmpf oge, %19, %33 : vector<2x1024xf32>
    %cst_15 = arith.constant 1.000000e+00 : f32
    %35 = vector.broadcast %cst_15 : f32 to vector<2x1024xf32>
    %36 = arith.select %34, %35, %29 : vector<2x1024xi1>, vector<2x1024xf32>
    %37 = arith.mulf %36, %32 : vector<2x1024xf32>
    %cst_16 = arith.constant 1.000000e+00 : f32
    %38 = vector.broadcast %cst_16 : f32 to vector<2x1024xf32>
    %39 = arith.subf %38, %37 : vector<2x1024xf32>
    %40 = arith.mulf %39, %21 : vector<2x1024xf32>
    %cst_17 = arith.constant 1.000000e+00 : f32
    %41 = vector.broadcast %cst_17 : f32 to vector<2x1024xf32>
    %42 = arith.subf %41, %21 : vector<2x1024xf32>
    %43 = arith.mulf %37, %42 : vector<2x1024xf32>
    %44 = arith.addf %40, %43 : vector<2x1024xf32>
    %cst_18 = arith.constant 2.500000e-01 : f32
    %45 = vector.broadcast %cst_18 : f32 to vector<2x1024xf32>
    %46 = arith.mulf %45, %21 : vector<2x1024xf32>
    %cst_19 = arith.constant 1.000000e+00 : f32
    %47 = vector.broadcast %cst_19 : f32 to vector<2x1024xf32>
    %48 = arith.subf %47, %21 : vector<2x1024xf32>
    %cst_20 = arith.constant 7.500000e-01 : f32
    %49 = vector.broadcast %cst_20 : f32 to vector<2x1024xf32>
    %50 = arith.mulf %49, %48 : vector<2x1024xf32>
    %51 = arith.addf %46, %50 : vector<2x1024xf32>
    %52 = arith.mulf %51, %25 : vector<2x1024xf32>
    %53 = arith.mulf %52, %44 : vector<2x1024xf32>
    %54 = arith.mulf %53, %44 : vector<2x1024xf32>
    %cst_21 = arith.constant 0.000000e+00 : f32
    %55 = vector.broadcast %cst_21 : f32 to vector<2x1024xf32>
    %56 = arith.maximumf %19, %55 : vector<2x1024xf32>
    %57 = arith.mulf %19, %21 : vector<2x1024xf32>
    %58 = arith.subf %56, %57 : vector<2x1024xf32>
    %cst_22 = arith.constant 1.000000e+00 : f32
    %59 = vector.broadcast %cst_22 : f32 to vector<2x1024xf32>
    %60 = arith.addf %59, %29 : vector<2x1024xf32>
    %61 = math.log %60 : vector<2x1024xf32>
    %62 = arith.addf %58, %61 : vector<2x1024xf32>
    %63 = arith.mulf %62, %54 : vector<2x1024xf32>
    %64 = vector.shape_cast %63 : vector<2x1024xf32> to vector<1x2x1024xf32>
    %cst_23 = arith.constant dense<0.000000e+00> : vector<1xf32>
    %65 = vector.multi_reduction <add>, %64, %cst_23 [1, 2] : vector<1x2x1024xf32> to vector<1xf32>
    %66 = vector.shape_cast %65 : vector<1xf32> to vector<1x1x1xf32>
    %67 = vector.extract %66[0, 0, 0] : f32 from vector<1x1x1xf32>
    %68 = vector.broadcast %18 : f32 to vector<1x128xf32>
    %c0_24 = arith.constant 0 : index
    %c0_25 = arith.constant 0 : index
    %69 = vector.load %arg6[%c0_24, %c0_25] : memref<1x128xf32, #tpu.memory_space<vmem>>, vector<1x128xf32>
    tpu.vector_store %arg6[%c0_24, %c0_25], %68 {strides = array<i32>} : memref<1x128xf32, #tpu.memory_space<vmem>>, vector<1x128xf32>,
    %70 = vector.broadcast %67 : f32 to vector<1x128xf32>
    %c0_26 = arith.constant 0 : index
    %c0_27 = arith.constant 0 : index
    %71 = vector.load %arg7[%c0_26, %c0_27] : memref<1x128xf32, #tpu.memory_space<vmem>>, vector<1x128xf32>
    tpu.vector_store %arg7[%c0_26, %c0_27], %70 {strides = array<i32>} : memref<1x128xf32, #tpu.memory_space<vmem>>, vector<1x128xf32>,
    return
  }
  func.func @transform_0(%arg0: i32) -> (i32, i32) {
    %c0_i32 = arith.constant 0 : i32
    %c0_i32_0 = arith.constant 0 : i32
    return %c0_i32, %arg0 : i32, i32
  }
  func.func @transform_1(%arg0: i32) -> (i32, i32) {
    %c0_i32 = arith.constant 0 : i32
    %c0_i32_0 = arith.constant 0 : i32
    return %c0_i32, %arg0 : i32, i32
  }
  func.func @transform_2(%arg0: i32) -> (i32, i32) {
    %c0_i32 = arith.constant 0 : i32
    %c0_i32_0 = arith.constant 0 : i32
    return %c0_i32, %arg0 : i32, i32
  }
  func.func @transform_3(%arg0: i32) -> (i32, i32) {
    %c0_i32 = arith.constant 0 : i32
    %c0_i32_0 = arith.constant 0 : i32
    return %c0_i32, %arg0 : i32, i32
  }
  func.func @transform_4(%arg0: i32) -> (i32, i32) {
    %c0_i32 = arith.constant 0 : i32
    %c0_i32_0 = arith.constant 0 : i32
    return %c0_i32, %arg0 : i32, i32
  }
  func.func @transform_5(%arg0: i32) -> (i32, i32) {
    %c0_i32 = arith.constant 0 : i32
    %c0_i32_0 = arith.constant 0 : i32
    return %arg0, %c0_i32 : i32, i32
  }
  func.func @transform_6(%arg0: i32) -> (i32, i32) {
    %c0_i32 = arith.constant 0 : i32
    %c0_i32_0 = arith.constant 0 : i32
    return %arg0, %c0_i32 : i32, i32
  }
}

</mosaic_0001>

<bundles_post_ra>
// kernel: tpu_custom_call.1
= control target key start
LH: loop header
LB: loop body
LE: loop exit
PB: predicated region body
PF: predicated region fallthrough
CT: control target
= control target key end

     0   :  { %12 = vsyncpa [#allocation3], 0  ;;  %s902_s0 = inlined_call_operand.hbm [shape: f32[2,4096], index: 0, kind: input, shape index: {}]   ;;  %s903_s1 = inlined_call_operand.hbm [shape: f32[2,4096], index: 1, kind: input, shape index: {}]   ;;  %s904_s2 = inlined_call_operand.hbm [shape: bf16[2,4096], index: 2, kind: input, shape index: {}]   ;;  %s905_s3 = inlined_call_operand.hbm [shape: f32[2,1024], index: 3, kind: input, shape index: {}]   ;;  %s906_s4 = inlined_call_operand.hbm [shape: s32[2,1024], index: 4, kind: input, shape index: {}]   ;;  %s907_s5 = inlined_call_operand.hbm [shape: f32[1,128], index: 5, kind: output, shape index: {0}]   ;;  %s908_s6 = inlined_call_operand.hbm [shape: f32[1,128], index: 6, kind: output, shape index: {1}]  }
   0x1   :  { %13 = vsyncpa [#allocation6], 0 }
   0x2   :  { %14 = vsyncpa [#allocation9], 0 }
   0x3   :  { %15 = vsyncpa [#allocation4], 0  ;;  %s33_s23 = sshll.u32 %s903_s1, 4  ;;  %s34_s23 = int_to_ptr.hbm [resolvable:$true] %s33_s23 }
   0x4   :  { %16 = vsyncpa [#allocation13], 0  ;;  %s700_s24 = smov [#allocation5]   ;;  %s55_s28 = sshll.u32 %s905_s3, 4  ;;  %s56_s28 = int_to_ptr.hbm [resolvable:$true] %s55_s28 }
   0x5   :  { %s35_s25 = sshll.u32 %s700_s24, 4  ;;  %s701_s29 = smov [#allocation8]   ;;  %s36_s25 = int_to_ptr.vmem [resolvable:$true] %s35_s25 }
   0x6   :  { %38 = dma.hbm_to_vmem [thread:$0]  %s34_s23, 1024, %s36_s25, [#allocation6]  }
   0x7   :  { %s57_s30 = sshll.u32 %s701_s29, 4  ;;  %s22_s9 = sshll.u32 %s902_s0, 4  ;;  %s58_s30 = int_to_ptr.vmem [resolvable:$true] %s57_s30  ;;  %s23_s9 = int_to_ptr.hbm [resolvable:$true] %s22_s9 }
   0x8   :  { %60 = dma.hbm_to_vmem [thread:$0]  %s56_s28, 256, %s58_s30, [#allocation9]  }
   0x9   :  { %s44_s11 = sshll.u32 %s904_s2, 4  ;;  %s702_s12 = smov [#allocation2]   ;;  %s45_s11 = int_to_ptr.hbm [resolvable:$true] %s44_s11 }
   0xa   :  { %s24_s13 = sshll.u32 %s702_s12, 4  ;;  %s703_s3 = smov [#allocation7]   ;;  %s25_s13 = int_to_ptr.vmem [resolvable:$true] %s24_s13 }
   0xb   :  { %27 = dma.hbm_to_vmem [thread:$0]  %s23_s9, 1024, %s25_s13, [#allocation3]  }
   0xc   :  { %s46_s14 = sshll.u32 %s703_s3, 4  ;;  %s66_s17 = sshll.u32 %s906_s4, 4  ;;  %s47_s14 = int_to_ptr.vmem [resolvable:$true] %s46_s14  ;;  %s67_s17 = int_to_ptr.hbm [resolvable:$true] %s66_s17 }
   0xd   :  { %49 = dma.hbm_to_vmem [thread:$0]  %s45_s11, 512, %s47_s14, [#allocation6]  }
   0xe   :  { %s704_s0 = smov [#allocation10]  }
   0xf   :  { %s68_s18 = sshll.u32 %s704_s0, 4  ;;  %s69_s18 = int_to_ptr.vmem [resolvable:$true] %s68_s18 }
  0x10   :  { %71 = dma.hbm_to_vmem [thread:$0]  %s67_s17, 256, %s69_s18, [#allocation9]  }
  0x11   :  { %690 = dma.done.wait [#allocation3], 1024  }
  0x12   :  { %691 = vsyncadd [#allocation3], 4294966272 }
  0x13   :  { %692 = dma.done.wait [#allocation6], 1536  }
  0x14   :  { %693 = vsyncadd [#allocation6], 4294965760 }
  0x15   :  { %694 = dma.done.wait [#allocation9], 512  }
  0x16   :  { %695 = vsyncadd [#allocation9], 4294966784  ;;  %v92_v0 = vld [vmem:[#allocation2] sm:$0xff]  ;;  %v93_v1 = vld [vmem:[#allocation2 + $0x8] sm:$0xff]  ;;  %vm265_vm4 = vcmask 1041408   ;;  %s706_s2 = smov [#allocation11]  }
  0x17   :  { %v100_v2 = vld [vmem:[#allocation5] sm:$0xff]  ;;  %v101_v3 = vld [vmem:[#allocation5 + $0x8] sm:$0xff]  ;;  %v94_v6 = vld [vmem:[#allocation2 + $0x10] sm:$0xff]  ;;  %s458_s4 = sshll.u32 %s706_s2, 4  ;;  %s460_s21 = sshll.u32 %s907_s5, 4  ;;  %s459_s4 = int_to_ptr.vmem [resolvable:$true] %s458_s4  ;;  %s461_s21 = int_to_ptr.hbm [resolvable:$true] %s460_s21 }
  0x18   :  { %v108_v4 = vsub.f32 %v92_v0, %v100_v2  ;;  %v109_v5 = vsub.f32 %v93_v1, %v101_v3  ;;  %v102_v7 = vld [vmem:[#allocation5 + $0x10] sm:$0xff]  ;;  %v95_v10 = vld [vmem:[#allocation2 + $0x18] sm:$0xff]  ;;  %v116_v15 = vld [vmem:[#allocation7] sm:$0xff]  ;;  %s707_s23 = smov [#allocation12]   ;;  %s471_s27 = sshll.u32 %s908_s6, 4  ;;  %s472_s27 = int_to_ptr.hbm [resolvable:$true] %s471_s27 }
  0x19   :  { %v103_v11 = vld [vmem:[#allocation5 + $0x18] sm:$0xff]  ;;  %v110_v14 = vsub.f32 %v94_v6, %v102_v7  ;;  %v96_v16 = vld [vmem:[#allocation2 + $0x20] sm:$0xff]  ;;  %v97_v23 = vld [vmem:[#allocation2 + $0x28] sm:$0xff]  ;;  %v120_v25 = vunpack.c.l.bf16 %v116_v15  ;;  %v121_v26 = vunpack.c.h.bf16 %v116_v15  ;;  %s469_s24 = sshll.u32 %s707_s23, 4  ;;  %s470_s24 = int_to_ptr.vmem [resolvable:$true] %s469_s24 }
  0x1a   :  { %v128_v8 = vand.u32 2147483647, %v108_v4  ;;  %v129_v9 = vand.u32 2147483647, %v109_v5  ;;  %v144_v12 = vmul.f32 0.5, %v108_v4  ;;  %v145_v13 = vmul.f32 0.5, %v109_v5 }
  0x1b   :  { %v104_v17 = vld [vmem:[#allocation5 + $0x20] sm:$0xff]  ;;  %v111_v20 = vsub.f32 %v95_v10, %v103_v11  ;;  %v105_v24 = vld [vmem:[#allocation5 + $0x28] sm:$0xff]  ;;  %v98_v29 = vld [vmem:[#allocation2 + $0x30] sm:$0xff]  ;;  %v130_v31 = vand.u32 2147483647, %v110_v14  ;;  %v146_v35 = vmul.f32 0.5, %v110_v14 }
  0x1c   :  { %v152_v18 = vmul.f32 %v144_v12, %v108_v4  ;;  %v153_v19 = vmul.f32 %v145_v13, %v109_v5  ;;  %vm758_vm0 = vcmp.lt.f32.partialorder %v128_v8, 1.0  ;;  %vm762_vm1 = vcmp.lt.f32.partialorder %v129_v9, 1.0  ;;  %v99_v32 = vld [vmem:[#allocation2 + $0x38] sm:$0xff]  ;;  %v106_v33 = vld [vmem:[#allocation5 + $0x30] sm:$0xff]  ;;  %v772_v41 = vld [vmem:[#allocation8] sm:$0xff] }
  0x1d   :  { %v488_v27 = vadd.f32 -0.5, %v128_v8  ;;  %v489_v28 = vadd.f32 -0.5, %v129_v9  ;;  %v766_v30 = vsub.f32 %v96_v16, %v104_v17  ;;  %v107_v34 = vld [vmem:[#allocation5 + $0x38] sm:$0xff]  ;;  %v113_v38 = vsub.f32 %v97_v23, %v105_v24  ;;  %v774_v42 = vld [vmem:[#allocation8 + $0x8] sm:$0xff]  ;;  %v118_v8 = vld [vmem:[#allocation7 + $0x10] sm:$0xff] }
  0x1e   :  { %v131_v39 = vand.u32 2147483647, %v111_v20  ;;  %v147_v40 = vmul.f32 0.5, %v111_v20  ;;  %v776_v45 = vsub.f32 %v98_v29, %v106_v33  ;;  %v778_v46 = vsub.f32 %v99_v32, %v107_v34  ;;  %v117_v47 = vld [vmem:[#allocation7 + $0x8] sm:$0xff]  ;;  %v806_v9 = vld [vmem:[#allocation7 + $0x18] sm:$0xff] }
  0x1f   :  { %v168_v36 = vsel %vm758_vm0, %v152_v18, %v488_v27  ;;  %v169_v37 = vsel %vm762_vm1, %v153_v19, %v489_v28  ;;  %v132_v48 = vand.u32 2147483647, %v766_v30  ;;  %v490_v49 = vadd.f32 -0.5, %v130_v31 }
  0x20   :  { %v176_v43 = vmul.f32 %v168_v36, %v120_v25  ;;  %v177_v44 = vmul.f32 %v169_v37, %v121_v26  ;;  %v154_v50 = vmul.f32 %v146_v35, %v110_v14  ;;  %v350_v51 = vand.u32 2147483647, %v772_v41  ;;  %v340_v37 = vld [vmem:[#allocation10] sm:$0xff] }
  0x21   :  { %v351_v52 = vand.u32 2147483647, %v774_v42  ;;  %v133_v53 = vand.u32 2147483647, %v113_v38  ;;  %vm783_vm2 = vcmp.lt.f32.partialorder %v130_v31, 1.0  ;;  %v155_v55 = vmul.f32 %v147_v40, %v111_v20 }
  0x22   :  { %192 = vst [vmem:[#allocation1] ss:$4 sm:$0xff] %v176_v43  ;;  %v491_v56 = vadd.f32 -0.5, %v131_v39  ;;  %vm787_vm3 = vcmp.lt.f32.partialorder %v131_v39, 1.0  ;;  %v352_v58 = vsub.f32 0.0, %v350_v51  ;;  %v122_v60 = vunpack.c.l.bf16 %v117_v47 }
  0x23   :  { %194 = vst [vmem:[#allocation1 + $0x20] ss:$4 sm:$0xff] %v177_v44  ;;  %v353_v59 = vsub.f32 0.0, %v351_v52  ;;  %v123_v61 = vunpack.c.h.bf16 %v117_v47  ;;  %v134_v62 = vand.u32 2147483647, %v776_v45  ;;  %vm793_vm5 = vcmp.lt.f32.partialorder %v132_v48, 1.0 }
  0x24   :  { %v135_v63 = vand.u32 2147483647, %v778_v46  ;;  %v170_v1 = vsel %vm783_vm2, %v154_v50, %v490_v49  ;;  %v354_v2 = vmul.f32 1.442695, %v352_v58  ;;  %vm799_vm6 = vcmp.lt.f32.partialorder %v133_v53, 1.0 }
  0x25   :  { %v356_v3 = vmul.f32 1.442695, %v353_v59  ;;  %v148_v5 = vmul.f32 0.5, %v766_v30  ;;  %v149_v6 = vmul.f32 0.5, %v113_v38  ;;  %v171_v7 = vsel %vm787_vm3, %v155_v55, %v491_v56 }
  0x26   :  { %v150_v10 = vmul.f32 0.5, %v776_v45  ;;  %v151_v11 = vmul.f32 0.5, %v778_v46  ;;  %v492_v12 = vadd.f32 -0.5, %v132_v48  ;;  %510 = vpow2.f32 %v354_v2 }
  0x27   :  { %v178_v13 = vmul.f32 %v170_v1, %v122_v60  ;;  %512 = vpow2.f32 %v356_v3  ;;  %v179_v16 = vmul.f32 %v171_v7, %v123_v61  ;;  %v124_v19 = vunpack.c.l.bf16 %v118_v8  ;;  %v341_v61 = vld [vmem:[#allocation10 + $0x8] sm:$0xff] }
  0x28   :  { %v125_v22 = vunpack.c.h.bf16 %v118_v8  ;;  %v126_v23 = vunpack.c.l.bf16 %v806_v9  ;;  %v156_v24 = vmul.f32 %v148_v5, %v766_v30  ;;  %v157_v25 = vmul.f32 %v149_v6, %v113_v38 }
  0x29   :  { %v195_v14 = vld.sshfl [vmem:[#allocation1] sm:$0xff pattern:$0x73625140]  ;;  %v196_v15 = vld.sshfl [vmem:[#allocation1 + $0x8] sm:$0xff pattern:$0x73625140]  ;;  %v158_v30 = vmul.f32 %v150_v10, %v776_v45  ;;  %v825_v39 = vmul.f32 %v151_v11, %v778_v46  ;;  %v828_v43 = vcvt.s32.f32 %v340_v37  ;;  %v127_v5 = vunpack.c.h.bf16 %v806_v9 }
  0x2a   :  { %v197_v17 = vld.sshfl [vmem:[#allocation1 + $0x10] sm:$0xff pattern:$0x73625140]  ;;  %v198_v18 = vld.sshfl [vmem:[#allocation1 + $0x18] sm:$0xff pattern:$0x73625140]  ;;  %v172_v45 = vsel %vm793_vm5, %v156_v24, %v492_v12  ;;  %v343_v10 = vcvt.s32.f32 %v341_v61 }
  0x2b   :  { %v199_v20 = vld.sshfl [vmem:[#allocation1 + $0x20] sm:$0xff pattern:$0x73625140]  ;;  %v200_v21 = vld.sshfl [vmem:[#allocation1 + $0x28] sm:$0xff pattern:$0x73625140]  ;;  %v180_v58 = vmul.f32 %v172_v45, %v124_v19 }
  0x2c   :  { %v201_v26 = vld.sshfl [vmem:[#allocation1 + $0x30] sm:$0xff pattern:$0x73625140]  ;;  %v202_v27 = vld.sshfl [vmem:[#allocation1 + $0x38] sm:$0xff pattern:$0x73625140]  ;;  %v511_v33 = vpop.eup %510 }
  0x2d   :  { %v493_v28 = vadd.f32 -0.5, %v133_v53  ;;  %203 = vst [vmem:[#allocation1] ss:$4 sm:$0xff] %v178_v13  ;;  %v266_v29 = vsel %vm265_vm4, %v195_v14, 0.0  ;;  %v267_v31 = vsel %vm265_vm4, %v196_v15, 0.0  ;;  %v269_v32 = vsel %vm265_vm4, %v197_v17, 0.0  ;;  %v513_v38 = vpop.eup %512 }
  0x2e   :  { %vm815_vm7 = vcmp.lt.f32.partialorder %v134_v62, 1.0  ;;  %vm819_vm8 = vcmp.lt.f32.partialorder %v135_v63, 1.0  ;;  %204 = vst [vmem:[#allocation1 + $0x20] ss:$4 sm:$0xff] %v179_v16  ;;  %v268_v36 = vadd.f32 %v267_v31, %v266_v29  ;;  %v271_v40 = vsel %vm265_vm4, %v198_v18, 0.0 }
  0x2f   :  { %v358_v44 = vadd.f32 1.0, %v511_v33  ;;  %v494_v47 = vadd.f32 -0.5, %v134_v62  ;;  %v359_v49 = vadd.f32 1.0, %v513_v38  ;;  %vm362_vm9 = vcmp.ge.f32.partialorder %v772_v41, 0.0 }
  0x30   :  { %v270_v48 = vadd.f32 %v269_v32, %v268_v36  ;;  %v831_v50 = vadd.f32 -0.5, %v135_v63  ;;  %v173_v51 = vsel %vm799_vm6, %v157_v25, %v493_v28  ;;  %v273_v46 = vsel %vm265_vm4, %v199_v20, 0.0 }
  0x31   :  { %v275_v53 = vsel %vm265_vm4, %v200_v21, 0.0  ;;  %v277_v54 = vsel %vm265_vm4, %v201_v26, 0.0  ;;  %514 = vrcp.f32 %v358_v44  ;;  %v279_v55 = vsel %vm265_vm4, %v202_v27, 0.0 }
  0x32   :  { %v272_v52 = vadd.f32 %v271_v40, %v270_v48  ;;  %516 = vrcp.f32 %v359_v49  ;;  %v364_v56 = vsel %vm362_vm9, 1.0, %v511_v33  ;;  %v372_v57 = vsub.f32 1.0, %v828_v43 }
  0x33   :  { %vm344_vm10 = vcmp.gt.s32.totalorder %v340_v37, 4294967295  ;;  %v174_v62 = vsel %vm815_vm7, %v158_v30, %v494_v47  ;;  %v181_v63 = vmul.f32 %v173_v51, %v125_v22  ;;  %v175_v6 = vsel %vm819_vm8, %v825_v39, %v831_v50 }
  0x34   :  { %v205_v59 = vld.sshfl [vmem:[#allocation1] sm:$0xff pattern:$0x73625140]  ;;  %v274_v60 = vadd.f32 %v273_v46, %v272_v52  ;;  %v206_v0 = vld.sshfl [vmem:[#allocation1 + $0x8] sm:$0xff pattern:$0x73625140]  ;;  %v182_v12 = vmul.f32 %v174_v62, %v126_v23  ;;  %518 = vlog2.f32 %v358_v44 }
  0x35   :  { %v207_v1 = vld.sshfl [vmem:[#allocation1 + $0x10] sm:$0xff pattern:$0x73625140]  ;;  %v208_v2 = vld.sshfl [vmem:[#allocation1 + $0x18] sm:$0xff pattern:$0x73625140]  ;;  %520 = vlog2.f32 %v359_v49  ;;  %v183_v49 = vmul.f32 %v175_v6, %v127_v5 }
  0x36   :  { %v209_v3 = vld.sshfl [vmem:[#allocation1 + $0x20] sm:$0xff pattern:$0x73625140]  ;;  %v276_v4 = vadd.f32 %v275_v53, %v274_v60  ;;  %v210_v7 = vld.sshfl [vmem:[#allocation1 + $0x28] sm:$0xff pattern:$0x73625140]  ;;  %v392_v53 = vmul.f32 %v828_v43, %v772_v41 }
  0x37   :  { %v849_v8 = vld.sshfl [vmem:[#allocation1 + $0x30] sm:$0xff pattern:$0x73625140]  ;;  %v515_v11 = vpop.eup %514  ;;  %v851_v13 = vld.sshfl [vmem:[#allocation1 + $0x38] sm:$0xff pattern:$0x73625140] }
  0x38   :  { %213 = vst [vmem:[#allocation1] ss:$4 sm:$0xff] %v180_v58  ;;  %v278_v14 = vadd.f32 %v277_v54, %v276_v4  ;;  %vm363_vm11 = vcmp.ge.f32.partialorder %v774_v42, 0.0  ;;  %v517_v15 = vpop.eup %516  ;;  %v281_v9 = vsel %vm265_vm4, %v205_v59, 0.0  ;;  %v283_v16 = vsel %vm265_vm4, %v206_v0, 0.0 }
  0x39   :  { %214 = vst [vmem:[#allocation1 + $0x20] ss:$4 sm:$0xff] %v181_v63  ;;  %v378_v17 = vmul.f32 0.25, %v828_v43  ;;  %v285_v19 = vsel %vm265_vm4, %v207_v1, 0.0  ;;  %v287_v20 = vsel %vm265_vm4, %v208_v2, 0.0  ;;  %vm345_vm12 = vcmp.gt.s32.totalorder %v341_v61, 4294967295 }
  0x3a   :  { %v280_v18 = vadd.f32 %v279_v55, %v278_v14  ;;  %v705_v21 = vmov 0.0   ;;  %v365_v23 = vsel %vm363_vm11, 1.0, %v513_v38  ;;  %v366_v24 = vmul.f32 %v515_v11, %v364_v56  ;;  %v519_v35 = vpop.eup %518 }
  0x3b   :  { %v496_v22 = vsel %vm344_vm10, 1.0, %v705_v21  ;;  %v373_v25 = vsub.f32 1.0, %v343_v10  ;;  %v367_v27 = vmul.f32 %v517_v15, %v365_v23  ;;  %v379_v28 = vmul.f32 0.25, %v343_v10  ;;  %v521_v44 = vpop.eup %520 }
  0x3c   :  { %v282_v26 = vadd.f32 %v281_v9, %v280_v18  ;;  %v380_v29 = vmul.f32 0.75, %v372_v57  ;;  %v497_v31 = vsel %vm345_vm12, 1.0, %v705_v21  ;;  %v368_v32 = vsub.f32 1.0, %v366_v24 }
  0x3d   :  { %v374_v33 = vmul.f32 %v372_v57, %v366_v24  ;;  %v381_v34 = vmul.f32 0.75, %v373_v25  ;;  %v369_v36 = vsub.f32 1.0, %v367_v27  ;;  %v375_v39 = vmul.f32 %v373_v25, %v367_v27 }
  0x3e   :  { %v284_v30 = vadd.f32 %v283_v16, %v282_v26  ;;  %v382_v40 = vadd.f32 %v380_v29, %v378_v17  ;;  %v289_v37 = vsel %vm265_vm4, %v209_v3, 0.0  ;;  %v370_v38 = vmul.f32 %v368_v32, %v828_v43 }
  0x3f   :  { %v383_v47 = vadd.f32 %v381_v34, %v379_v28  ;;  %v390_v48 = vmax.f32 %v772_v41, 0.0  ;;  %v215_v50 = vld.sshfl [vmem:[#allocation1] sm:$0xff pattern:$0x73625140]  ;;  %v371_v52 = vmul.f32 %v369_v36, %v343_v10  ;;  %v291_v0 = vsel %vm265_vm4, %v210_v7, 0.0 }
  0x40   :  { %v216_v45 = vld.sshfl [vmem:[#allocation1 + $0x8] sm:$0xff pattern:$0x73625140]  ;;  %v217_v51 = vld.sshfl [vmem:[#allocation1 + $0x10] sm:$0xff pattern:$0x73625140]  ;;  %v286_v46 = vadd.f32 %v285_v19, %v284_v30  ;;  %v376_v56 = vadd.f32 %v374_v33, %v370_v38  ;;  %v384_v57 = vmul.f32 %v496_v22, %v382_v40  ;;  %v393_v1 = vmul.f32 %v343_v10, %v774_v42 }
  0x41   :  { %v218_v54 = vld.sshfl [vmem:[#allocation1 + $0x18] sm:$0xff pattern:$0x73625140]  ;;  %v219_v55 = vld.sshfl [vmem:[#allocation1 + $0x20] sm:$0xff pattern:$0x73625140]  ;;  %v385_v58 = vmul.f32 %v497_v31, %v383_v47  ;;  %v377_v62 = vadd.f32 %v375_v39, %v371_v52  ;;  %v394_v3 = vsub.f32 %v390_v48, %v392_v53 }
  0x42   :  { %v220_v59 = vld.sshfl [vmem:[#allocation1 + $0x28] sm:$0xff pattern:$0x73625140]  ;;  %v221_v60 = vld.sshfl [vmem:[#allocation1 + $0x30] sm:$0xff pattern:$0x73625140]  ;;  %v288_v61 = vadd.f32 %v287_v20, %v286_v46  ;;  %v386_v43 = vmul.f32 %v384_v57, %v376_v56 }
  0x43   :  { %v222_v63 = vld.sshfl [vmem:[#allocation1 + $0x38] sm:$0xff pattern:$0x73625140]  ;;  %223 = vst [vmem:[#allocation1] ss:$4 sm:$0xff] %v182_v12  ;;  %v293_v41 = vsel %vm265_vm4, %v849_v8, 0.0  ;;  %v387_v4 = vmul.f32 %v385_v58, %v377_v62 }
  0x44   :  { %224 = vst [vmem:[#allocation1 + $0x20] ss:$4 sm:$0xff] %v183_v49  ;;  %v290_v2 = vadd.f32 %v289_v37, %v288_v61  ;;  %v391_v5 = vmax.f32 %v774_v42, 0.0  ;;  %v397_v11 = vmul.f32 0.6931472, %v519_v35  ;;  %v295_v12 = vsel %vm265_vm4, %v851_v13, 0.0 }
  0x45   :  { %v399_v14 = vmul.f32 0.6931472, %v521_v44  ;;  %v388_v15 = vmul.f32 %v386_v43, %v376_v56  ;;  %v389_v7 = vmul.f32 %v387_v4, %v377_v62  ;;  %v297_v17 = vsel %vm265_vm4, %v215_v50, 0.0 }
  0x46   :  { %v292_v6 = vadd.f32 %v291_v0, %v290_v2  ;;  %v395_v9 = vsub.f32 %v391_v5, %v393_v1  ;;  %v400_v16 = vadd.f32 %v397_v11, %v394_v3  ;;  %v299_v20 = vsel %vm265_vm4, %v216_v45, 0.0 }
  0x47   :  { %v301_v42 = vsel %vm265_vm4, %v217_v51, 0.0  ;;  %v303_v32 = vsel %vm265_vm4, %v218_v54, 0.0  ;;  %v305_v34 = vsel %vm265_vm4, %v219_v55, 0.0  ;;  %v307_v30 = vsel %vm265_vm4, %v220_v59, 0.0 }
  0x48   :  { %v294_v10 = vadd.f32 %v293_v41, %v292_v6  ;;  %v401_v18 = vadd.f32 %v399_v14, %v395_v9  ;;  %v402_v21 = vmul.f32 %v400_v16, %v388_v15  ;;  %v309_v39 = vsel %vm265_vm4, %v221_v60, 0.0 }
  0x49   :  { %v311_v47 = vsel %vm265_vm4, %v222_v63, 0.0 }
  0x4a   :  { %v226_v19 = vld.sshfl [vmem:[#allocation1 + $0x8] sm:$0xff pattern:$0x73625140]  ;;  %v296_v8 = vadd.f32 %v295_v12, %v294_v10  ;;  %v225_v22 = vld.sshfl [vmem:[#allocation1] sm:$0xff pattern:$0x73625140]  ;;  %v403_v25 = vmul.f32 %v401_v18, %v389_v7 }
  0x4b   :  { %v227_v23 = vld.sshfl [vmem:[#allocation1 + $0x10] sm:$0xff pattern:$0x73625140]  ;;  %v228_v24 = vld.sshfl [vmem:[#allocation1 + $0x18] sm:$0xff pattern:$0x73625140] }
  0x4c   :  { %v229_v13 = vld.sshfl [vmem:[#allocation1 + $0x20] sm:$0xff pattern:$0x73625140]  ;;  %v230_v26 = vld.sshfl [vmem:[#allocation1 + $0x28] sm:$0xff pattern:$0x73625140]  ;;  %v298_v27 = vadd.f32 %v297_v17, %v296_v8 }
  0x4d   :  { %v231_v28 = vld.sshfl [vmem:[#allocation1 + $0x30] sm:$0xff pattern:$0x73625140]  ;;  %v232_v29 = vld.sshfl [vmem:[#allocation1 + $0x38] sm:$0xff pattern:$0x73625140] }
  0x4e   :  { %v300_v31 = vadd.f32 %v299_v20, %v298_v27  ;;  %406 = vst [vmem:[#allocation1] ss:$4 sm:$0xff] %v402_v21  ;;  %v313_v49 = vsel %vm265_vm4, %v225_v22, 0.0  ;;  %v315_v54 = vsel %vm265_vm4, %v226_v19, 0.0  ;;  %v317_v57 = vsel %vm265_vm4, %v227_v23, 0.0 }
  0x4f   :  { %408 = vst [vmem:[#allocation1 + $0x20] ss:$4 sm:$0xff] %v403_v25  ;;  %v319_v61 = vsel %vm265_vm4, %v228_v24, 0.0  ;;  %v321_v0 = vsel %vm265_vm4, %v229_v13, 0.0  ;;  %v323_v41 = vsel %vm265_vm4, %v230_v26, 0.0  ;;  %v325_v5 = vsel %vm265_vm4, %v231_v28, 0.0 }
  0x50   :  { %v302_v33 = vadd.f32 %v301_v42, %v300_v31  ;;  %v327_v12 = vsel %vm265_vm4, %v232_v29, 0.0 }
  0x52   :  { %v304_v35 = vadd.f32 %v303_v32, %v302_v33 }
  0x54   :  { %v306_v36 = vadd.f32 %v305_v34, %v304_v35 }
  0x55   :  { %v409_v40 = vld.sshfl [vmem:[#allocation1] sm:$0xff pattern:$0x73625140]  ;;  %v410_v37 = vld.sshfl [vmem:[#allocation1 + $0x8] sm:$0xff pattern:$0x73625140] }
  0x56   :  { %v308_v44 = vadd.f32 %v307_v30, %v306_v36  ;;  %v411_v38 = vld.sshfl [vmem:[#allocation1 + $0x10] sm:$0xff pattern:$0x73625140]  ;;  %v425_v50 = vsel %vm265_vm4, %v409_v40, 0.0  ;;  %v426_v45 = vsel %vm265_vm4, %v410_v37, 0.0 }
  0x57   :  { %v428_v51 = vsel %vm265_vm4, %v411_v38, 0.0  ;;  %v412_v52 = vld.sshfl [vmem:[#allocation1 + $0x18] sm:$0xff pattern:$0x73625140]  ;;  %v427_v53 = vadd.f32 %v426_v45, %v425_v50 }
  0x58   :  { %v310_v48 = vadd.f32 %v309_v39, %v308_v44  ;;  %v430_v58 = vsel %vm265_vm4, %v412_v52, 0.0  ;;  %v413_v60 = vld.sshfl [vmem:[#allocation1 + $0x20] sm:$0xff pattern:$0x73625140] }
  0x59   :  { %v429_v56 = vadd.f32 %v428_v51, %v427_v53  ;;  %v432_v1 = vsel %vm265_vm4, %v413_v60, 0.0  ;;  %v414_v3 = vld.sshfl [vmem:[#allocation1 + $0x28] sm:$0xff pattern:$0x73625140] }
  0x5a   :  { %v312_v46 = vadd.f32 %v311_v47, %v310_v48  ;;  %v434_v6 = vsel %vm265_vm4, %v414_v3, 0.0  ;;  %v415_v14 = vld.sshfl [vmem:[#allocation1 + $0x30] sm:$0xff pattern:$0x73625140] }
  0x5b   :  { %v431_v63 = vadd.f32 %v430_v58, %v429_v56  ;;  %v436_v9 = vsel %vm265_vm4, %v415_v14, 0.0  ;;  %v416_v16 = vld.sshfl [vmem:[#allocation1 + $0x38] sm:$0xff pattern:$0x73625140] }
  0x5c   :  { %v314_v55 = vadd.f32 %v313_v49, %v312_v46  ;;  %v438_v18 = vsel %vm265_vm4, %v416_v16, 0.0 }
  0x5d   :  { %v433_v4 = vadd.f32 %v432_v1, %v431_v63 }
  0x5e   :  { %v316_v59 = vadd.f32 %v315_v54, %v314_v55 }
  0x5f   :  { %v435_v7 = vadd.f32 %v434_v6, %v433_v4 }
  0x60   :  { %v318_v62 = vadd.f32 %v317_v57, %v316_v59 }
  0x61   :  { %v437_v17 = vadd.f32 %v436_v9, %v435_v7 }
  0x62   :  { %v320_v2 = vadd.f32 %v319_v61, %v318_v62 }
  0x63   :  { %v439_v19 = vadd.f32 %v438_v18, %v437_v17 }
  0x64   :  { %v322_v43 = vadd.f32 %v321_v0, %v320_v2 }
  0x66   :  { %v324_v11 = vadd.f32 %v323_v41, %v322_v43 }
  0x68   :  { %v326_v15 = vadd.f32 %v325_v5, %v324_v11 }
  0x6a   :  { %v328_v10 = vadd.f32 %v327_v12, %v326_v15 }
  0x6c   :  { %329 = vadd.xlane.f32.xlu0 %v328_v10 }
  0x74   :  { %440 = vadd.xlane.f32.xlu0 %v439_v19 }
  0xdf   :  { %v330_v8 = vpop.xlane.xlu0 %329 }
  0xe0   :  { %v331_v20 = vrot.slane %v330_v8, 4 }
  0xe2   :  { %v332_v42 = vadd.f32 %v331_v20, %v330_v8 }
  0xe4   :  { %v333_v21 = vrot.slane %v332_v42, 2 }
  0xe6   :  { %v334_v22 = vadd.f32 %v333_v21, %v332_v42 }
  0xe7   :  { %v441_v23 = vpop.xlane.xlu0 %440 }
  0xe8   :  { %v442_v24 = vrot.slane %v441_v23, 4  ;;  %v335_v25 = vrot.slane %v334_v22, 1 }
  0xea   :  { %v443_v13 = vadd.f32 %v442_v24, %v441_v23  ;;  %v336_v26 = vadd.f32 %v335_v25, %v334_v22 }
  0xec   :  { %v444_v27 = vrot.slane %v443_v13, 2  ;;  %498 = vpush %v336_v26 }
  0xee   :  { %v445_v28 = vadd.f32 %v444_v27, %v443_v13 }
  0xf0   :  { %v446_v29 = vrot.slane %v445_v28, 1 }
  0xf2   :  { %v447_v31 = vadd.f32 %v446_v29, %v445_v28 }
  0xf4   :  { %500 = vpush %v447_v31 }
 0x11d   :  { %s499_s22 = spop %498 }
 0x11e   :  { %v449_v32 = vstv %s499_s22 }
 0x11f   :  { %450 = vst [vmem:[#allocation11] sm:$0x1] %v449_v32 }
 0x120   :  { %463 = dma.vmem_to_hbm [thread:$0]  %s459_s4, 16, %s461_s21, [#allocation4]  }
 0x125   :  { %s501_s28 = spop %500 }
 0x126   :  { %v451_v33 = vstv %s501_s28 }
 0x127   :  { %452 = vst [vmem:[#allocation12] sm:$0x1] %v451_v33 }
 0x128   :  { %474 = dma.vmem_to_hbm [thread:$0]  %s470_s24, 16, %s472_s27, [#allocation13]  }
 0x129   :  { %696 = dma.done.wait [#allocation4], 16  }
 0x12a   :  { %697 = vsyncadd [#allocation4], 4294967280 }
 0x12b   :  { %698 = dma.done.wait [#allocation13], 16  }
 0x12c   :  { %699 = vsyncadd [#allocation13], 4294967280 }
 0x12d   :  { %483 = vsyncpa [#allocation3], 1 }
 0x12e   :  { %484 = vsyncpa [#allocation6], 1 }
 0x12f   :  { %485 = vsyncpa [#allocation9], 1 }
 0x130   :  { %486 = vsyncpa [#allocation4], 1 }
 0x131   :  { %487 = vsyncpa [#allocation13], 1 }

</bundles_post_ra>
